<compile_context>
chip_gen: v6e
topology: v6e:2x2x1
jax: 0.10.0
libtpu: 0.0.40
codegen_flags: <defaults>
</compile_context>

<pallas_src>
import functools

import jax
import jax.numpy as jnp
import numpy as np
from jax.experimental import pallas as pl
from jax.experimental.pallas import tpu as pltpu

LANE = 128
SUBLANE = 8


def _round_up(x, m):
    return (x + m - 1) // m * m


# ----------------------------- fused Pallas kernel ---------------------------

def gcn_fused_kernel(a_ref, x_ref, w_ref, b_ref, o_ref, h_ref, *, out_dim):
    """One grid step == one GCNConv layer.

    a_ref: [Np, Np]    normalized adjacency (resident in VMEM across layers)
    x_ref: [Np, Fp]    padded input features (consumed at layer 0 only)
    w_ref: [1, Fp, Fp] this layer's zero-padded weight
    b_ref: [1, 1, Fp]  this layer's zero-padded bias
    o_ref: [Np, Fp]    final output (written at the last layer only)
    h_ref: [Np, Fp]    VMEM scratch holding the running activation
    """
    layer = pl.program_id(0)
    last = pl.num_programs(0) - 1

    @pl.when(layer == 0)
    def _():
        h_ref[...] = x_ref[...]

    # X @ W (small) then A_hat @ (XW), both f32-accumulated on the MXU.
    xw = jnp.dot(h_ref[...], w_ref[0], preferred_element_type=jnp.float32)
    out = jnp.dot(a_ref[...], xw, preferred_element_type=jnp.float32) + b_ref[0]

    @pl.when(layer < last)
    def _():
        h_ref[...] = jnp.maximum(out, 0.0)

    @pl.when(layer == last)
    def _():
        # Fused, numerically stable log_softmax over the *real* output columns.
        col = jax.lax.broadcasted_iota(jnp.int32, out.shape, dimension=1)
        valid = col < out_dim
        neg_big = jnp.float32(-1e30)
        logits = jnp.where(valid, out, neg_big)
        m = jnp.max(logits, axis=1, keepdims=True)
        s = logits - m
        lse = jnp.log(jnp.sum(jnp.where(valid, jnp.exp(s), 0.0),
                              axis=1, keepdims=True))
        o_ref[...] = jnp.where(valid, s - lse, 0.0).astype(o_ref.dtype)


# ----------------------------- wrapper ---------------------------------------

def gcn_forward(params, x, a_norm):
    """params: list of (w [f_in, f_out], b [1, f_out]); x: [N, input_dim]."""
    n, f_in = x.shape
    out_dim = params[-1][0].shape[1]
    num_layers = len(params)

    # Common padded sizes: rows to a sublane multiple, features to 128 lanes.
    all_dims = [f_in] + [w.shape[1] for w, _ in params]
    fp = _round_up(max(all_dims), LANE)
    np_ = _round_up(n, SUBLANE)

    # Zero-pad everything (padding is provably inert: padded cols of h stay 0,
    # padded rows of A are 0, log_softmax is masked to out_dim).
    a_p = jnp.zeros((np_, np_), jnp.float32).at[:n, :n].set(a_norm)
    x_p = jnp.zeros((np_, fp), jnp.float32).at[:n, :f_in].set(x)

    ws, bs = [], []
    for w, b in params:
        fi, fo = w.shape
        ws.append(jnp.zeros((fp, fp), jnp.float32).at[:fi, :fo].set(w))
        bs.append(jnp.zeros((1, fp), jnp.float32).at[:, :fo].set(b.reshape(1, fo)))
    w_stack = jnp.stack(ws)          # [L, Fp, Fp]
    b_stack = jnp.stack(bs)          # [L, 1, Fp]

    kernel = functools.partial(gcn_fused_kernel, out_dim=out_dim)
    out_p = pl.pallas_call(
        kernel,
        out_shape=jax.ShapeDtypeStruct((np_, fp), jnp.float32),
        grid_spec=pltpu.PrefetchScalarGridSpec(
            num_scalar_prefetch=0,
            grid=(num_layers,),
            in_specs=[
                pl.BlockSpec((np_, np_), lambda l: (0, 0)),    # A_hat, resident
                pl.BlockSpec((np_, fp), lambda l: (0, 0)),     # X, resident
                pl.BlockSpec((1, fp, fp), lambda l: (l, 0, 0)),  # per-layer W
                pl.BlockSpec((1, 1, fp), lambda l: (l, 0, 0)),   # per-layer b
            ],
            out_specs=pl.BlockSpec((np_, fp), lambda l: (0, 0)),
            scratch_shapes=[pltpu.VMEM((np_, fp), jnp.float32)],
        ),
        compiler_params=pltpu.CompilerParams(
            dimension_semantics=("arbitrary",),   # layers are sequential
        ),
    )(a_p, x_p, w_stack, b_stack)

    return out_p[:n, :out_dim]


# ----------------------------- plain-JAX glue ---------------------------------

def build_norm_adj(edge_index, num_nodes):
    """Dense D^-1/2 (A + I) D^-1/2 from edge_index [2, E] (src, dst)."""
    src, dst = edge_index[0], edge_index[1]
    a = jnp.zeros((num_nodes, num_nodes), jnp.float32)
    a = a.at[dst, src].set(1.0)                      # message flows src -> dst
    a = a + jnp.eye(num_nodes, dtype=jnp.float32)    # add self-loops
    deg = jnp.sum(a, axis=1)
    d_inv_sqrt = jnp.where(deg > 0, 1.0 / jnp.sqrt(deg), 0.0)
    return d_inv_sqrt[:, None] * a * d_inv_sqrt[None, :]


def init_gcn_params(key, input_dim, hidden_dims, output_dim):
    dims = [input_dim] + list(hidden_dims) + [output_dim]
    params = []
    for i in range(len(dims) - 1):
        key, wk = jax.random.split(key)
        f_in, f_out = dims[i], dims[i + 1]
        limit = float(np.sqrt(6.0 / (f_in + f_out)))   # glorot uniform
        w = jax.random.uniform(wk, (f_in, f_out), jnp.float32, -limit, limit)
        b = jnp.zeros((1, f_out), jnp.float32)
        params.append((w, b))
    return params


# ----------------------------- reference (pure JAX) ---------------------------

def gcn_forward_ref(params, x, a_norm):
    h = x
    for w, b in params[:-1]:
        h = jnp.maximum(a_norm @ (h @ w) + b, 0.0)
    w, b = params[-1]
    h = a_norm @ (h @ w) + b
    return jax.nn.log_softmax(h, axis=1)


# ----------------------------- main -------------------------------------------

if __name__ == "__main__":
    N = 8            # number of graph nodes
    INPUT_DIM = 16
    HIDDEN_DIMS = [32, 16]
    OUTPUT_DIM = 8

    key = jax.random.PRNGKey(0)
    key, xk = jax.random.split(key)
    x = jax.random.normal(xk, (N, INPUT_DIM), jnp.float32)

    # deterministic bidirectional ring graph over N nodes
    src = np.concatenate([np.arange(N), (np.arange(N) + 1) % N])
    dst = np.concatenate([(np.arange(N) + 1) % N, np.arange(N)])
    edge_index = jnp.asarray(np.stack([src, dst]), jnp.int32)   # [2, E]

    a_norm = build_norm_adj(edge_index, N)
    params = init_gcn_params(key, INPUT_DIM, HIDDEN_DIMS, OUTPUT_DIM)

    out = gcn_forward(params, x, a_norm)
    out = jax.block_until_ready(out)

    ref = gcn_forward_ref(params, x, a_norm)
    np.testing.assert_allclose(np.asarray(out), np.asarray(ref), rtol=1e-5, atol=1e-5)

    print("KERNEL_OK")
</pallas_src>

<mosaic_0001>
module attributes {stable_mosaic.version = 11 : i64} {
  func.func @gcn_fused_kernel(%arg0: i32, %arg1: memref<8x8xf32, #tpu.memory_space<vmem>>, %arg2: memref<8x128xf32, #tpu.memory_space<vmem>>, %arg3: memref<1x128x128xf32, #tpu.memory_space<vmem>>, %arg4: memref<1x1x128xf32, #tpu.memory_space<vmem>>, %arg5: memref<8x128xf32, #tpu.memory_space<vmem>>, %arg6: memref<8x128xf32, #tpu.memory_space<vmem>>) attributes {dimension_semantics = [#tpu.dimension_semantics<arbitrary>], iteration_bounds = array<i64: 3>, scalar_prefetch = 0 : i64, scratch_operands = 1 : i64, tpu.core_type = #tpu.core_type<tc>, window_params = [{pipeline_mode = #tpu.pipeline_mode<synchronous>, transform_indices = @transform_0, window_bounds = array<i64: 8, 8>}, {pipeline_mode = #tpu.pipeline_mode<synchronous>, transform_indices = @transform_1, window_bounds = array<i64: 8, 128>}, {transform_indices = @transform_2, window_bounds = array<i64: 1, 128, 128>}, {transform_indices = @transform_3, window_bounds = array<i64: 1, 1, 128>}, {pipeline_mode = #tpu.pipeline_mode<synchronous>, transform_indices = @transform_4, window_bounds = array<i64: 8, 128>}]} {
    %c0_i32 = arith.constant 0 : i32
    %0 = arith.cmpi eq, %arg0, %c0_i32 : i32
    %1 = arith.extui %0 : i1 to i32
    %c0_i32_0 = arith.constant 0 : i32
    %2 = arith.cmpi ne, %1, %c0_i32_0 : i32
    scf.if %2 {
      %c0_14 = arith.constant 0 : index
      %c0_15 = arith.constant 0 : index
      %19 = vector.load %arg2[%c0_14, %c0_15] : memref<8x128xf32, #tpu.memory_space<vmem>>, vector<8x128xf32>
      %c0_16 = arith.constant 0 : index
      %c0_17 = arith.constant 0 : index
      %20 = vector.load %arg6[%c0_16, %c0_17] : memref<8x128xf32, #tpu.memory_space<vmem>>, vector<8x128xf32>
      tpu.vector_store %arg6[%c0_16, %c0_17], %19 {strides = array<i32>} : memref<8x128xf32, #tpu.memory_space<vmem>>, vector<8x128xf32>,
    } else {
    }
    %c0 = arith.constant 0 : index
    %c0_1 = arith.constant 0 : index
    %3 = vector.load %arg6[%c0, %c0_1] : memref<8x128xf32, #tpu.memory_space<vmem>>, vector<8x128xf32>
    %c0_2 = arith.constant 0 : index
    %c0_3 = arith.constant 0 : index
    %c0_4 = arith.constant 0 : index
    %4 = vector.load %arg3[%c0_2, %c0_3, %c0_4] : memref<1x128x128xf32, #tpu.memory_space<vmem>>, vector<1x128x128xf32>
    %5 = vector.shape_cast %4 : vector<1x128x128xf32> to vector<128x128xf32>
    %cst = arith.constant dense<0.000000e+00> : vector<8x128xf32>
    %6 = tpu.matmul %3, %5, %cst {dimension_numbers = #tpu.dot_dimension_numbers<[1], [0], [0], [1], [0, 0, 1, 1], [], []>} : vector<8x128xf32>, vector<128x128xf32>, vector<8x128xf32> -> vector<8x128xf32>
    %c0_5 = arith.constant 0 : index
    %c0_6 = arith.constant 0 : index
    %7 = vector.load %arg1[%c0_5, %c0_6] : memref<8x8xf32, #tpu.memory_space<vmem>>, vector<8x8xf32>
    %cst_7 = arith.constant dense<0.000000e+00> : vector<8x128xf32>
    %8 = tpu.matmul %7, %6, %cst_7 {dimension_numbers = #tpu.dot_dimension_numbers<[1], [0], [0], [1], [0, 0, 1, 1], [], []>} : vector<8x8xf32>, vector<8x128xf32>, vector<8x128xf32> -> vector<8x128xf32>
    %c0_8 = arith.constant 0 : index
    %c0_9 = arith.constant 0 : index
    %c0_10 = arith.constant 0 : index
    %9 = vector.load %arg4[%c0_8, %c0_9, %c0_10] : memref<1x1x128xf32, #tpu.memory_space<vmem>>, vector<1x1x128xf32>
    %10 = vector.shape_cast %9 : vector<1x1x128xf32> to vector<1x128xf32>
    %11 = vector.broadcast %10 : vector<1x128xf32> to vector<8x128xf32>
    %12 = arith.addf %8, %11 : vector<8x128xf32>
    %c2_i32 = arith.constant 2 : i32
    %13 = arith.cmpi slt, %arg0, %c2_i32 : i32
    %14 = arith.extui %13 : i1 to i32
    %c0_i32_11 = arith.constant 0 : i32
    %15 = arith.cmpi ne, %14, %c0_i32_11 : i32
    scf.if %15 {
      %cst_14 = arith.constant 0.000000e+00 : f32
      %19 = vector.broadcast %cst_14 : f32 to vector<8x128xf32>
      %20 = arith.maximumf %12, %19 : vector<8x128xf32>
      %c0_15 = arith.constant 0 : index
      %c0_16 = arith.constant 0 : index
      %21 = vector.load %arg6[%c0_15, %c0_16] : memref<8x128xf32, #tpu.memory_space<vmem>>, vector<8x128xf32>
      tpu.vector_store %arg6[%c0_15, %c0_16], %20 {strides = array<i32>} : memref<8x128xf32, #tpu.memory_space<vmem>>, vector<8x128xf32>,
    } else {
    }
    %c2_i32_12 = arith.constant 2 : i32
    %16 = arith.cmpi eq, %arg0, %c2_i32_12 : i32
    %17 = arith.extui %16 : i1 to i32
    %c0_i32_13 = arith.constant 0 : i32
    %18 = arith.cmpi ne, %17, %c0_i32_13 : i32
    scf.if %18 {
      %19 = tpu.iota {dimensions = array<i32: 1>} : vector<8x128xi32>
      %c8_i32 = arith.constant 8 : i32
      %20 = vector.broadcast %c8_i32 : i32 to vector<8x128xi32>
      %21 = arith.cmpi slt, %19, %20 : vector<8x128xi32>
      %cst_14 = arith.constant -1.000000e+30 : f32
      %22 = vector.broadcast %cst_14 : f32 to vector<8x128xf32>
      %23 = arith.select %21, %12, %22 : vector<8x128xi1>, vector<8x128xf32>
      %cst_15 = arith.constant dense<0xFF800000> : vector<8xf32>
      %24 = vector.multi_reduction <maximumf>, %23, %cst_15 [1] : vector<8x128xf32> to vector<8xf32>
      %25 = vector.shape_cast %24 : vector<8xf32> to vector<8x1xf32>
      %26 = vector.broadcast %25 : vector<8x1xf32> to vector<8x128xf32>
      %27 = arith.subf %23, %26 : vector<8x128xf32>
      %28 = math.exp %27 : vector<8x128xf32>
      %cst_16 = arith.constant 0.000000e+00 : f32
      %29 = vector.broadcast %cst_16 : f32 to vector<8x128xf32>
      %30 = arith.select %21, %28, %29 : vector<8x128xi1>, vector<8x128xf32>
      %cst_17 = arith.constant dense<0.000000e+00> : vector<8xf32>
      %31 = vector.multi_reduction <add>, %30, %cst_17 [1] : vector<8x128xf32> to vector<8xf32>
      %32 = vector.shape_cast %31 : vector<8xf32> to vector<8x1xf32>
      %33 = math.log %32 : vector<8x1xf32>
      %34 = vector.broadcast %33 : vector<8x1xf32> to vector<8x128xf32>
      %35 = arith.subf %27, %34 : vector<8x128xf32>
      %cst_18 = arith.constant 0.000000e+00 : f32
      %36 = vector.broadcast %cst_18 : f32 to vector<8x128xf32>
      %37 = arith.select %21, %35, %36 : vector<8x128xi1>, vector<8x128xf32>
      %c0_19 = arith.constant 0 : index
      %c0_20 = arith.constant 0 : index
      %38 = vector.load %arg5[%c0_19, %c0_20] : memref<8x128xf32, #tpu.memory_space<vmem>>, vector<8x128xf32>
      tpu.vector_store %arg5[%c0_19, %c0_20], %37 {strides = array<i32>} : memref<8x128xf32, #tpu.memory_space<vmem>>, vector<8x128xf32>,
    } else {
    }
    return
  }
  func.func @transform_0(%arg0: i32) -> (i32, i32) {
    %c0_i32 = arith.constant 0 : i32
    %c0_i32_0 = arith.constant 0 : i32
    %c0_i32_1 = arith.constant 0 : i32
    return %c0_i32, %c0_i32_0 : i32, i32
  }
  func.func @transform_1(%arg0: i32) -> (i32, i32) {
    %c0_i32 = arith.constant 0 : i32
    %c0_i32_0 = arith.constant 0 : i32
    %c0_i32_1 = arith.constant 0 : i32
    return %c0_i32, %c0_i32_0 : i32, i32
  }
  func.func @transform_2(%arg0: i32) -> (i32, i32, i32) {
    %c0_i32 = arith.constant 0 : i32
    %c0_i32_0 = arith.constant 0 : i32
    %c0_i32_1 = arith.constant 0 : i32
    return %arg0, %c0_i32, %c0_i32_0 : i32, i32, i32
  }
  func.func @transform_3(%arg0: i32) -> (i32, i32, i32) {
    %c0_i32 = arith.constant 0 : i32
    %c0_i32_0 = arith.constant 0 : i32
    %c0_i32_1 = arith.constant 0 : i32
    return %arg0, %c0_i32, %c0_i32_0 : i32, i32, i32
  }
  func.func @transform_4(%arg0: i32) -> (i32, i32) {
    %c0_i32 = arith.constant 0 : i32
    %c0_i32_0 = arith.constant 0 : i32
    %c0_i32_1 = arith.constant 0 : i32
    return %c0_i32, %c0_i32_0 : i32, i32
  }
}

</mosaic_0001>

<bundles_post_ra>
// kernel: tpu_custom_call.1
= control target key start
LH: loop header
LB: loop body
LE: loop exit
PB: predicated region body
PF: predicated region fallthrough
CT: control target
= control target key end

     0   :  { %9 = vsyncpa [#allocation4], 0  ;;  %s1061_s0 = inlined_call_operand.hbm [shape: f32[8,8], index: 0, kind: input, shape index: {}]   ;;  %s1062_s1 = inlined_call_operand.hbm [shape: f32[8,128], index: 1, kind: input, shape index: {}]   ;;  %s1063_s2 = inlined_call_operand.hbm [shape: f32[3,128,128], index: 2, kind: input, shape index: {}]   ;;  %s1064_s3 = inlined_call_operand.vmem [shape: f32[3,1,128], index: 3, kind: input, shape index: {}]   ;;  %s1065_s4 = inlined_call_operand.hbm [shape: f32[8,128], index: 4, kind: output, shape index: {}]  }
   0x1   :  { %10 = vsyncpa [#allocation7], 0 }
   0x2   :  { %11 = vsyncpa [#allocation5], 0  ;;  %s869_s15 = smov 0   ;;  %s871_s16 = smov 0  }
   0x3   :  { %s873_s17 = smov 0   ;;  %s875_s18 = smov 0  }
   0x4 LB: > { %s888_s19 = sadd.s32 4294967295, %s834_s18   ;;  %s891_s20 = sadd.s32 1, %s834_s18   ;;  %s834_s18 = sphi %s875_s18, %s1086_s18   ;;  %s830_s17 = sphi %s873_s17, %s1085_s17   ;;  %s826_s16 = sphi %s871_s16, %s1084_s16   ;;  %s822_s15 = sphi %s869_s15, %s1083_s15  }
   0x5   : > { %s63_s21 = ssub.s32 %s834_s18, %s891_s20  ;;  %s66_s22 = sadd.s32 1, %s830_s17 }
   0x6   : > { %p64_p0 = scmp.eq.s32.totalorder %s63_s21, 0  ;;  %p73_p1 = scmp.ne.s32.totalorder %s830_s17, %s826_s16 }
   0x7   : > { %p74_p2 = scmp.eq.s32.totalorder %s834_s18, 0  ;;  %p79_p3 = scmp.ne.s32.totalorder %s826_s16, %s822_s15 }
   0x8   : > { %s901_s23 = scalar_select %p64_p0, %s830_s17, %s66_s22  }
   0x9   : > { %p903_p4 = por %p74_p2, %p73_p1  ;;  %p1066_p5 = scmp.eq.s32.totalorder %s888_s19, 0 }
   0xa   : > { %p529_p6 = scmp.ge.s32.totalorder %s834_s18, 1  ;;  %p137_p7 = scmp.lt.s32.totalorder %s834_s18, 4 }
   0xb   : > { %p912_p8 = por %p1066_p5, %p79_p3  ;;  %s836_s27 = smov [#allocation3]  }
   0xc   : > { %p917_p10 = pnand %p529_p6, %p137_p7  ;;  %s150_s28 = sshll.u32 %s836_s27, 4  ;;  %s151_s28 = int_to_ptr.vmem [resolvable:$true] %s150_s28 }
   0xd   : > { %s1071_s25 = scalar_select %p912_p8, 1, 0 }
   0xe   : > { %s1072_s26 = scalar_select %p917_p10, 1, 0 }
   0xf   : > { %p623_p11 = pneg %p917_p10  ;;  %p636_p12 = scmp.lt.s32.totalorder %s834_s18, 3 }
  0x10   : > { %s837_s30 = smov [#allocation6]   ;;  %s172_s7 = sand.u32 1, %s834_s18  }
  0x11   : > { %p926_p13 = pnand %p623_p11, %p1066_p5  ;;  %s161_s5 = sshll.u32 %s837_s30, 4  ;;  %s162_s5 = int_to_ptr.vmem [resolvable:$true] %s161_s5 }
  0x12   : > { %p932_p0 = pnand %p636_p12, %p903_p4  ;;  %s695_s8 = scalar_lea.vmem %s151_s28, 128 }
  0x13   : > { %p686_p1 = pneg %p926_p13  ;;  %p696_p2 = scmp.ne.s32.totalorder %s151_s28, %s695_s8 }
  0x14   : > { %s1074_s6 = scalar_select %p932_p0, 1, 0 }
  0x15   : > { %p698_p3 = pnand %p696_p2, %p686_p1  ;;  %p703_p7 = scmp.lt.s32.totalorder %s151_s28, %s151_s28 }
  0x16   : > { %p704_p11 = scmp.lt.s32.totalorder %s695_s8, %s695_s8 }
  0x17   : > { %p699_p6 = pneg %p698_p3 }
  0x18   : > { %p705_p9 = por %p704_p11, %p703_p7 }
  0x1a   : > { %p706_p5 = pnand %p705_p9, %p699_p6 }
  0x1c   : > { %709 = shalt.err (!%p706_p5)
}
  0x1d   : > { %626 = dma.hbm_to_vmem [thread:$0]  (!%p926_p13), %s1061_s0, 128, %s151_s28, [#allocation4]  }
  0x1e   : > { %s721_s11 = scalar_lea.vmem %s162_s5, 128  ;;  %p729_p2 = scmp.lt.s32.totalorder %s162_s5, %s162_s5 }
  0x1f   : > { %p722_p4 = scmp.ne.s32.totalorder %s162_s5, %s721_s11  ;;  %p730_p3 = scmp.lt.s32.totalorder %s721_s11, %s721_s11 }
  0x21   : > { %p724_p12 = pnand %p722_p4, %p686_p1  ;;  %p731_p10 = por %p730_p3, %p729_p2 }
  0x23   : > { %p725_p8 = pneg %p724_p12 }
  0x25   : > { %p732_p0 = pnand %p731_p10, %p725_p8 }
  0x27   : > { %735 = shalt.err (!%p732_p0)
}
  0x28   : > { %629 = dma.hbm_to_vmem [thread:$0]  (!%p926_p13), %s1062_s1, 128, %s162_s5, [#allocation7]  }
  0x29   : > { %s174_s14 = sand.u32 1, %s830_s17   ;;  %s549_s15 = sshll.u32 %s834_s18, 11 }
  0x2a   : > { %s533_s21 = sshll.u32 %s174_s14, 7  ;;  %s960_s27 = scalar_lea.hbm %s1063_s2, %s549_s15 }
  0x2b   : > { %s176_s28 = scalar_lea.vmem [#allocation8], %s533_s21  ;;  %s964_s30 = scalar_lea.sflag [#allocation4], %s172_s7 }
  0x2c   : > { %s183_s29 = sshll.u32 %s176_s28, 4  ;;  %s736_s8 = scalar_lea.hbm %s960_s27, 2048  ;;  %s962_s29 = int_to_ptr.vmem [resolvable:$true] %s183_s29 }
  0x2d   : > { %p737_p5 = scmp.ne.s32.totalorder %s960_s27, %s736_s8  ;;  %p1075_p8 = scmp.ne.s32.totalorder %s1074_s6, 0 }
  0x2e   : > { %s741_s9 = scalar_lea.hbm %s1063_s2, 6144  ;;  %p742_p0 = scmp.lt.s32.totalorder %s960_s27, %s1063_s2 }
  0x2f   : > { %p738_p9 = pneg %p1075_p8  ;;  %p743_p1 = scmp.lt.s32.totalorder %s741_s9, %s736_s8 }
  0x31   : > { %p739_p10 = pnand %p738_p9, %p737_p5  ;;  %p744_p6 = por %p743_p1, %p742_p0 }
  0x33   : > { %p740_p13 = pneg %p739_p10 }
  0x35   : > { %p745_p7 = pnand %p744_p6, %p740_p13 }
  0x37   : > { %748 = shalt.err (!%p745_p7)
}
  0x38   : > { %s749_s7 = scalar_lea.vmem %s962_s29, 2048  ;;  %s838_s12 = smov [#allocation8]  }
  0x39   : > { %p750_p11 = scmp.ne.s32.totalorder %s962_s29, %s749_s7  ;;  %s754_s13 = sshll.u32 %s838_s12, 4  ;;  %s755_s13 = int_to_ptr.vmem [resolvable:$false] %s754_s13 }
  0x3a   : > { %s756_s14 = scalar_lea.vmem %s755_s13, 4096  ;;  %p757_p2 = scmp.lt.s32.totalorder %s962_s29, %s755_s13 }
  0x3b   : > { %p752_p4 = pnand %p750_p11, %p738_p9  ;;  %p758_p3 = scmp.lt.s32.totalorder %s756_s14, %s749_s7 }
  0x3d   : > { %p753_p12 = pneg %p752_p4  ;;  %p759_p5 = por %p758_p3, %p757_p2 }
  0x3f   : > { %p760_p10 = pnand %p759_p5, %p753_p12 }
  0x41   : > { %763 = shalt.err (!%p760_p10)
}
  0x42   : > { %s839_s15 = smov 128   ;;  %s840_s21 = smov 8  }
  0x43   : > { %633 = dma.hbm_to_vmem [thread:$0]  (!%p1075_p8), %s960_s27, 2048, %s962_s29, %s964_s30, %s839_s15, %s839_s15, %s840_s21  }
  0x44   : > { %p1076_p9 = scmp.ne.s32.totalorder %s1072_s26, 0 }
  0x45   : > { %p1077_p13 = scmp.eq.s32.totalorder (!%p1076_p9), %s888_s19, 0 }
  0x46   : > { %201 = sbr.rel (%p1076_p9) target bundleno = 863 (0x35f), region = 36 }
  0x4b   : > { %805 = dma.done.wait (%p1077_p13), [#allocation4], 128   ;;  %p1078_p0 = pmov %p1077_p13 }
  0x4d   : > { %807 = vsyncadd (%p1078_p0), [#allocation4], 4294967168  ;;  %p1079_p1 = pmov %p1078_p0 }
  0x4e   : > { %p1080_p6 = pmov %p1078_p0 }
  0x4f   : > { %809 = dma.done.wait (%p1079_p1), [#allocation7], 128  }
  0x50   : > { %811 = vsyncadd (%p1080_p6), [#allocation7], 4294967168  ;;  %s211_s6 = sand.u32 1, %s888_s19   ;;  %s213_s22 = sand.u32 1, %s826_s16  }
  0x51   : > { %s539_s24 = sshll.u32 %s213_s22, 7  ;;  %s212_s26 = scalar_lea.sflag [#allocation4], %s211_s6 }
  0x52   : > { %s997_s27 = scalar_lea.vmem [#allocation8], %s539_s24  ;;  %p1081_p8 = scmp.ne.s32.totalorder %s1071_s25, 0 }
  0x54   : > { %813 = dma.done.wait (%p1081_p8), %s212_s26, 2048  }
  0x55   : > { %815 = vsyncadd (%p1081_p8), %s212_s26, 4294965248  ;;  %p238_p7 = scmp.lt.s32.totalorder %s888_s19, 2  ;;  %p1082_p11 = scmp.ne.s32.totalorder %s888_s19, 0 }
  0x57   : > { %s1005_s28 = scalar_select %p238_p7, %s888_s19, 2 }
  0x58   : > { %244 = sbr.rel (%p1082_p11) target bundleno = 95 (0x5f), region = 52 }
  0x59   : > { %s240_s8 = scalar_lea.vmem %s1064_s3, %s1005_s28 }
  0x5d   : > { %v245_v0 = vld [vmem:[#allocation6] sm:$0xff] }
  0x5e   : > { %246 = vst [vmem:[#allocation2] sm:$0xff] %v245_v0 }
  0x5f PF: > { %v263_v1 = vld [vmem:[%s997_s27 + $0x78] sm:$0xff]  ;;  %v841_v2 = vmov 0.0   ;;  %v262_v3 = vld [vmem:[%s997_s27 + $0x70] sm:$0xff]  ;;  %vm842_vm0 = vmmov 0   ;;  %v261_v4 = vld [vmem:[%s997_s27 + $0x68] sm:$0xff]  ;;  %vm342_vm1 = vcmask 64512  }
  0x60   : > { %569 = vmatprep.subr.mxu0 %v841_v2  ;;  %601 = vmatprep.mubr.msk.f32.mxu0 %vm842_vm0, %v841_v2  ;;  %v260_v5 = vld [vmem:[%s997_s27 + $0x60] sm:$0xff]  ;;  %v259_v6 = vld [vmem:[%s997_s27 + $0x58] sm:$0xff]  ;;  %v258_v7 = vld [vmem:[%s997_s27 + $0x50] sm:$0xff]  ;;  %p543_p4 = scmp.ge.s32.totalorder %s888_s19, 2 }
  0x61   : > { %570 = vmatpush3.msra.mxu0 %v263_v1  ;;  %604 = vmatprep.subr.mxu1 %v841_v2  ;;  %v257_v8 = vld [vmem:[%s997_s27 + $0x48] sm:$0xff]  ;;  %v256_v9 = vld [vmem:[%s997_s27 + $0x40] sm:$0xff]  ;;  %v255_v10 = vld [vmem:[%s997_s27 + $0x38] sm:$0xff] }
  0x62   : > { %571 = vmatprep.subr.mxu0 %v841_v2  ;;  %606 = vmatprep.mubr.msk.f32.mxu1 %vm842_vm0, %v841_v2  ;;  %v254_v11 = vld [vmem:[%s997_s27 + $0x30] sm:$0xff]  ;;  %v253_v12 = vld [vmem:[%s997_s27 + $0x28] sm:$0xff]  ;;  %v252_v13 = vld [vmem:[%s997_s27 + $0x20] sm:$0xff] }
  0x63   : > { %572 = vmatpush3.msra.mxu0 %v262_v3  ;;  %v251_v14 = vld [vmem:[%s997_s27 + $0x18] sm:$0xff]  ;;  %v250_v15 = vld [vmem:[%s997_s27 + $0x10] sm:$0xff]  ;;  %v249_v16 = vld [vmem:[%s997_s27 + $0x8] sm:$0xff] }
  0x64   : > { %573 = vmatprep.subr.mxu0 %v841_v2  ;;  %v248_v17 = vld [vmem:[%s997_s27] sm:$0xff]  ;;  %v334_v19 = vld [vmem:[#allocation3] sm:$0xff]  ;;  %v541_v22 = vld [vmem:[%s240_s8] ss:$0 sm:$0xff] }
  0x65   : > { %574 = vmatpush3.msra.mxu0 %v261_v4  ;;  %v247_v18 = vld [vmem:[#allocation2] sm:$0xff] }
  0x66   : > { %575 = vmatprep.subr.mxu0 %v841_v2 }
  0x67   : > { %576 = vmatpush3.msra.mxu0 %v260_v5 }
  0x68   : > { %577 = vmatprep.subr.mxu0 %v841_v2 }
  0x69   : > { %578 = vmatpush3.msra.mxu0 %v259_v6 }
  0x6a   : > { %579 = vmatprep.subr.mxu0 %v841_v2 }
  0x6b   : > { %580 = vmatpush3.msra.mxu0 %v258_v7 }
  0x6c   : > { %581 = vmatprep.subr.mxu0 %v841_v2 }
  0x6d   : > { %582 = vmatpush3.msra.mxu0 %v257_v8 }
  0x6e   : > { %583 = vmatprep.subr.mxu0 %v841_v2 }
  0x6f   : > { %584 = vmatpush3.msra.mxu0 %v256_v9 }
  0x70   : > { %585 = vmatprep.subr.mxu0 %v841_v2 }
  0x71   : > { %586 = vmatpush3.msra.mxu0 %v255_v10 }
  0x72   : > { %587 = vmatprep.subr.mxu0 %v841_v2 }
  0x73   : > { %588 = vmatpush3.msra.mxu0 %v254_v11 }
  0x74   : > { %589 = vmatprep.subr.mxu0 %v841_v2 }
  0x75   : > { %590 = vmatpush3.msra.mxu0 %v253_v12 }
  0x76   : > { %591 = vmatprep.subr.mxu0 %v841_v2 }
  0x77   : > { %592 = vmatpush3.msra.mxu0 %v252_v13 }
  0x78   : > { %593 = vmatprep.subr.mxu0 %v841_v2 }
  0x79   : > { %594 = vmatpush3.msra.mxu0 %v251_v14 }
  0x7a   : > { %595 = vmatprep.subr.mxu0 %v841_v2 }
  0x7b   : > { %596 = vmatpush3.msra.mxu0 %v250_v15 }
  0x7c   : > { %597 = vmatprep.subr.mxu0 %v841_v2 }
  0x7d   : > { %598 = vmatpush3.msra.mxu0 %v249_v16 }
  0x7e   : > { %599 = vmatprep.subr.mxu0 %v841_v2 }
  0x7f   : > { %600 = vmatpush3.msra.mxu0 %v248_v17 }
  0x80   : > { %602 = vmatmul.mubr.f32.vlgmr.msra.gmra.mxu0 %v247_v18 }
 0x140   : > { %v330_v20 = vpop.f32.mrf.mxu0 }
 0x141   : > { %605 = vmatpush3.msra.mxu1 %v330_v20 }
 0x142   : > { %v603_v21 = vpop.f32.mrf.mxu0  ;;  %607 = vmatmul.mubr.msk.f32.vlgmr.msra.gmra.mxu1 %vm342_vm1, %v334_v19 }
 0x200   : > { %419 = sbr.rel (%p543_p4) target bundleno = 520 (0x208), region = 56 }
 0x202   : > { %v412_v23 = vpop.f32.mrf.mxu1 }
 0x203   : > { %v413_v24 = vadd.f32 %v541_v22, %v412_v23 }
 0x204   : > { %v608_v25 = vpop.f32.mrf.mxu1 }
 0x205   : > { %v420_v26 = vmax.f32 %v413_v24, 0.0 }
 0x207   : > { %421 = vst [vmem:[#allocation2] sm:$0xff] %v420_v26 }
 0x208 PF: > { %p544_p12 = scmp.ne.s32.totalorder %s888_s19, 2 }
 0x20a   : > { %425 = sbr.rel (%p544_p12) target bundleno = 848 (0x350), region = 60 }
 0x20f   : > { %v426_v27 = vlaneseq }
 0x211   : > { %v427_v28 = vand.u32 127, %v426_v27 }
 0x213   : > { %vm428_vm2 = vcmp.lt.s32.totalorder %v427_v28, 8 }
 0x214   : > { %v429_v29 = vsel %vm428_vm2, %v413_v24, -1e+30 }
 0x215   : > { %430 = vmax.xlane.f32.xlu0 %v429_v29 }
 0x29e   : > { %v431_v30 = vpop.xlane.xlu0 %430 }
 0x29f   : > { %v432_v31 = vsub.f32 %v429_v29, %v431_v30 }
 0x2a1   : > { %v433_v32 = vmul.f32 1.442695, %v432_v31 }
 0x2a3   : > { %680 = vpow2.f32 %v433_v32 }
 0x2b0   : > { %v681_v33 = vpop.eup %680 }
 0x2b1   : > { %v435_v34 = vsel %vm428_vm2, %v681_v33, 0.0 }
 0x2b2   : > { %436 = vadd.xlane.f32.xlu0 %v435_v34 }
 0x33b   : > { %v437_v35 = vpop.xlane.xlu0 %436 }
 0x33c   : > { %682 = vlog2.f32 %v437_v35 }
 0x349   : > { %v683_v36 = vpop.eup %682 }
 0x34a   : > { %v439_v37 = vmul.f32 0.6931472, %v683_v36 }
 0x34c   : > { %v440_v38 = vsub.f32 %v432_v31, %v439_v37 }
 0x34e   : > { %v441_v39 = vsel %vm428_vm2, %v440_v38, 0.0 }
 0x34f   : > { %442 = vst [vmem:[#allocation9] sm:$0xff] %v441_v39 }
 0x350 PF: > { %p639_p2 = scmp.eq.s32.totalorder %s888_s19, 2  ;;  %s843_s5 = smov [#allocation9]  }
 0x351   : > { %s450_s9 = sshll.u32 %s843_s5, 4  ;;  %s451_s9 = int_to_ptr.vmem [resolvable:$true] %s450_s9 }
 0x352   : > { %s764_s10 = scalar_lea.vmem %s451_s9, 128  ;;  %p771_p9 = scmp.lt.s32.totalorder %s451_s9, %s451_s9 }
 0x353   : > { %p765_p3 = scmp.ne.s32.totalorder %s451_s9, %s764_s10  ;;  %p772_p13 = scmp.lt.s32.totalorder %s764_s10, %s764_s10 }
 0x355   : > { %p766_p5 = pnand %p765_p3, %p639_p2  ;;  %p773_p0 = por %p772_p13, %p771_p9 }
 0x357   : > { %p767_p10 = pneg %p766_p5 }
 0x359   : > { %p774_p1 = pnand %p773_p0, %p767_p10 }
 0x35b   : > { %777 = shalt.err (!%p774_p1)
}
 0x35c   : > { %620 = dma.vmem_to_hbm [thread:$0]  (%p639_p2), %s451_s9, 128, %s1065_s4, [#allocation5]  }
 0x35d   : > { %817 = dma.done.wait (%p639_p2), [#allocation5], 128  }
 0x35e   : > { %819 = vsyncadd (%p639_p2), [#allocation5], 4294967168 }
 0x35f PF: > { %p14_p6 = scmp.ge.s32.totalorder %s891_s20, 5   ;;  %s1083_s15 = smov %s826_s16 }
 0x360   : > { %s1084_s16 = smov %s830_s17  ;;  %s1085_s17 = smov %s901_s23 }
 0x361   : > { %s1086_s18 = smov %s891_s20  ;;  %16 = sbr.rel (!%p14_p6) target bundleno = 4 (0x4), region = 95 }
 0x366   :  { %463 = vsyncpa [#allocation4], 1 }
 0x367   :  { %465 = vsyncpa [#allocation4 + $0x1], 1 }
 0x368   :  { %466 = vsyncpa [#allocation7], 1 }
 0x369   :  { %467 = vsyncpa [#allocation5], 1 }
 0x36a   :  { %469 = vsyncpa [#allocation5 + $0x1], 1 }

</bundles_post_ra>
